<compile_context>
chip_gen: v7x
topology: tpu7x:2x2x1
jax: 0.10.0
libtpu: 0.0.40
codegen_flags: <defaults>
</compile_context>

<pallas_src>
import functools

import jax
import jax.numpy as jnp
from jax.experimental import pallas as pl
from jax.experimental.pallas import tpu as pltpu


def _round_up(x, m):
    return ((x + m - 1) // m) * m


def _mlp_kernel(state_ref, belief_ref,
                w1s_ref, w1b_ref, b1_ref,
                w2_ref, b2_ref,
                wh_ref, bh_ref,
                out_ref, *, out_dim):
    # fc1 (+ relu): concat fused as two dots into a single f32 accumulator.
    h = (jnp.dot(state_ref[...], w1s_ref[...], preferred_element_type=jnp.float32)
         + jnp.dot(belief_ref[...], w1b_ref[...], preferred_element_type=jnp.float32)
         + b1_ref[...])
    h = jnp.maximum(h, 0.0)

    # fc2 + relu
    h = jnp.dot(h, w2_ref[...], preferred_element_type=jnp.float32) + b2_ref[...]
    h = jnp.maximum(h, 0.0)

    # merged heads, one lane-dense matmul:
    #   cols [0, out_dim)          -> mean
    #   cols [out_dim, 2*out_dim)  -> logstd  (clip to [-2, 2], then exp)
    #   cols [2*out_dim, out_pad)  -> zero padding (zero weights / bias)
    raw = jnp.dot(h, wh_ref[...], preferred_element_type=jnp.float32) + bh_ref[...]
    col = jax.lax.broadcasted_iota(jnp.int32, raw.shape, 1)
    is_std = jnp.logical_and(col >= out_dim, col < 2 * out_dim)
    std = jnp.exp(jnp.clip(raw, -2.0, 2.0))       # EUP slot; mean lanes = free filler
    out_ref[...] = jnp.where(is_std, std, raw).astype(out_ref.dtype)


def stochastic_net_forward(state, belief, params, *, batch_tile=512):
    """Forward pass of StochasticNet_Base. Returns (mean, std)."""
    B, Ds = state.shape
    _, Db = belief.shape
    H = params["w1"].shape[1]
    out_dim = params["wm"].shape[1]
    out_pad = max(128, _round_up(2 * out_dim, 128))

    # --- wrapper-side layout plumbing on tiny weight tensors only ---
    w1s = params["w1"][:Ds]                              # [Ds, H]
    w1b = params["w1"][Ds:]                              # [Db, H]
    pad_n = out_pad - 2 * out_dim
    wh = jnp.pad(jnp.concatenate([params["wm"], params["ws"]], axis=1),
                 ((0, 0), (0, pad_n)))                   # [H, out_pad]
    bh = jnp.pad(jnp.concatenate([params["bm"], params["bs"]], axis=1),
                 ((0, 0), (0, pad_n)))                   # [1, out_pad]

    # --- batch tiling: TB multiple of 8 sublanes; rows padded to multiple of TB ---
    TB = min(_round_up(B, 8), batch_tile)
    B_pad = _round_up(B, TB)
    if B_pad != B:
        state = jnp.pad(state, ((0, B_pad - B), (0, 0)))
        belief = jnp.pad(belief, ((0, B_pad - B), (0, 0)))
    nb = B_pad // TB

    kernel = functools.partial(_mlp_kernel, out_dim=out_dim)

    flops = 2 * B_pad * (Ds * H + Db * H + H * H + H * out_pad)
    bytes_accessed = 4 * (B_pad * (Ds + Db + out_pad)
                          + (Ds + Db) * H + H + H * H + H
                          + H * out_pad + out_pad)

    out = pl.pallas_call(
        kernel,
        out_shape=jax.ShapeDtypeStruct((B_pad, out_pad), jnp.float32),
        grid=(nb,),
        in_specs=[
            pl.BlockSpec((TB, Ds), lambda i: (i, 0)),        # state tile
            pl.BlockSpec((TB, Db), lambda i: (i, 0)),        # belief tile
            pl.BlockSpec((Ds, H), lambda i: (0, 0)),         # resident weights
            pl.BlockSpec((Db, H), lambda i: (0, 0)),
            pl.BlockSpec((1, H), lambda i: (0, 0)),
            pl.BlockSpec((H, H), lambda i: (0, 0)),
            pl.BlockSpec((1, H), lambda i: (0, 0)),
            pl.BlockSpec((H, out_pad), lambda i: (0, 0)),
            pl.BlockSpec((1, out_pad), lambda i: (0, 0)),
        ],
        out_specs=pl.BlockSpec((TB, out_pad), lambda i: (i, 0)),
        compiler_params=pltpu.CompilerParams(
            dimension_semantics=("parallel",)),
        cost_estimate=pl.CostEstimate(
            flops=flops,
            transcendentals=B_pad * out_pad,
            bytes_accessed=bytes_accessed),
    )(state, belief, w1s, w1b, params["b1"], params["w2"], params["b2"], wh, bh)

    mean = out[:B, :out_dim]
    std = out[:B, out_dim:2 * out_dim]
    return mean, std


def init_params(key, in_dim, h_dim, out_dim):
    """Deterministic init mimicking nn.Linear default (uniform +/- 1/sqrt(fan_in)).

    Weights stored as [in, out] (transposed vs PyTorch)."""
    def linear(k, fan_in, fan_out):
        kw, kb = jax.random.split(k)
        bound = 1.0 / jnp.sqrt(jnp.float32(fan_in))
        w = jax.random.uniform(kw, (fan_in, fan_out), jnp.float32, -bound, bound)
        b = jax.random.uniform(kb, (1, fan_out), jnp.float32, -bound, bound)
        return w, b

    k1, k2, k3, k4 = jax.random.split(key, 4)
    w1, b1 = linear(k1, in_dim, h_dim)
    w2, b2 = linear(k2, h_dim, h_dim)
    wm, bm = linear(k3, h_dim, out_dim)
    ws, bs = linear(k4, h_dim, out_dim)
    return dict(w1=w1, b1=b1, w2=w2, b2=b2, wm=wm, bm=bm, ws=ws, bs=bs)


def _reference_forward(state, belief, p):
    x = jnp.concatenate((state, belief), axis=1)
    h = jnp.maximum(x @ p["w1"] + p["b1"], 0.0)
    h = jnp.maximum(h @ p["w2"] + p["b2"], 0.0)
    mean = h @ p["wm"] + p["bm"]
    logstd = jnp.clip(h @ p["ws"] + p["bs"], -2.0, 2.0)
    return mean, jnp.exp(logstd)


if __name__ == "__main__":
    key = jax.random.PRNGKey(0)
    k_state, k_belief, k_params = jax.random.split(key, 3)

    batch = 8
    state_dim = 16
    belief_dim = 16
    in_dim = state_dim + belief_dim   # 32
    h_dim = 32
    out_dim = 8

    state = jax.random.normal(k_state, (batch, state_dim), jnp.float32)
    belief = jax.random.normal(k_belief, (batch, belief_dim), jnp.float32)
    params = init_params(k_params, in_dim, h_dim, out_dim)

    fwd = jax.jit(stochastic_net_forward)
    mean, std = fwd(state, belief, params)
    jax.block_until_ready((mean, std))

    ref_mean, ref_std = _reference_forward(state, belief, params)
    assert mean.shape == (batch, out_dim) and std.shape == (batch, out_dim)
    assert jnp.allclose(mean, ref_mean, atol=1e-5, rtol=1e-5)
    assert jnp.allclose(std, ref_std, atol=1e-5, rtol=1e-5)
    assert bool(jnp.all(std > 0.0))

    # also exercise a batch that needs row padding / multiple grid steps
    state2 = jax.random.normal(k_state, (37, state_dim), jnp.float32)
    belief2 = jax.random.normal(k_belief, (37, belief_dim), jnp.float32)
    m2, s2 = jax.jit(functools.partial(stochastic_net_forward, batch_tile=16))(
        state2, belief2, params)
    jax.block_until_ready((m2, s2))
    rm2, rs2 = _reference_forward(state2, belief2, params)
    assert jnp.allclose(m2, rm2, atol=1e-5, rtol=1e-5)
    assert jnp.allclose(s2, rs2, atol=1e-5, rtol=1e-5)

    print("KERNEL_OK")
</pallas_src>

<mosaic_0001>
module attributes {stable_mosaic.version = 11 : i64} {
  func.func @_mlp_kernel(%arg0: i32, %arg1: memref<8x16xf32, #tpu.memory_space<vmem>>, %arg2: memref<8x16xf32, #tpu.memory_space<vmem>>, %arg3: memref<16x32xf32, #tpu.memory_space<vmem>>, %arg4: memref<16x32xf32, #tpu.memory_space<vmem>>, %arg5: memref<1x32xf32, #tpu.memory_space<vmem>>, %arg6: memref<32x32xf32, #tpu.memory_space<vmem>>, %arg7: memref<1x32xf32, #tpu.memory_space<vmem>>, %arg8: memref<32x128xf32, #tpu.memory_space<vmem>>, %arg9: memref<1x128xf32, #tpu.memory_space<vmem>>, %arg10: memref<8x128xf32, #tpu.memory_space<vmem>>) attributes {dimension_semantics = [#tpu.dimension_semantics<parallel>], iteration_bounds = array<i64: 1>, scalar_prefetch = 0 : i64, scratch_operands = 0 : i64, tpu.core_type = #tpu.core_type<tc>, window_params = [{transform_indices = @transform_0, window_bounds = array<i64: 8, 16>}, {transform_indices = @transform_1, window_bounds = array<i64: 8, 16>}, {pipeline_mode = #tpu.pipeline_mode<synchronous>, transform_indices = @transform_2, window_bounds = array<i64: 16, 32>}, {pipeline_mode = #tpu.pipeline_mode<synchronous>, transform_indices = @transform_3, window_bounds = array<i64: 16, 32>}, {pipeline_mode = #tpu.pipeline_mode<synchronous>, transform_indices = @transform_4, window_bounds = array<i64: 1, 32>}, {pipeline_mode = #tpu.pipeline_mode<synchronous>, transform_indices = @transform_5, window_bounds = array<i64: 32, 32>}, {pipeline_mode = #tpu.pipeline_mode<synchronous>, transform_indices = @transform_6, window_bounds = array<i64: 1, 32>}, {pipeline_mode = #tpu.pipeline_mode<synchronous>, transform_indices = @transform_7, window_bounds = array<i64: 32, 128>}, {pipeline_mode = #tpu.pipeline_mode<synchronous>, transform_indices = @transform_8, window_bounds = array<i64: 1, 128>}, {transform_indices = @transform_9, window_bounds = array<i64: 8, 128>}]} {
    %c0 = arith.constant 0 : index
    %c0_0 = arith.constant 0 : index
    %0 = vector.load %arg1[%c0, %c0_0] : memref<8x16xf32, #tpu.memory_space<vmem>>, vector<8x16xf32>
    %c0_1 = arith.constant 0 : index
    %c0_2 = arith.constant 0 : index
    %1 = vector.load %arg3[%c0_1, %c0_2] : memref<16x32xf32, #tpu.memory_space<vmem>>, vector<16x32xf32>
    %cst = arith.constant dense<0.000000e+00> : vector<8x32xf32>
    %2 = tpu.matmul %0, %1, %cst {dimension_numbers = #tpu.dot_dimension_numbers<[1], [0], [0], [1], [0, 0, 1, 1], [], []>} : vector<8x16xf32>, vector<16x32xf32>, vector<8x32xf32> -> vector<8x32xf32>
    %c0_3 = arith.constant 0 : index
    %c0_4 = arith.constant 0 : index
    %3 = vector.load %arg2[%c0_3, %c0_4] : memref<8x16xf32, #tpu.memory_space<vmem>>, vector<8x16xf32>
    %c0_5 = arith.constant 0 : index
    %c0_6 = arith.constant 0 : index
    %4 = vector.load %arg4[%c0_5, %c0_6] : memref<16x32xf32, #tpu.memory_space<vmem>>, vector<16x32xf32>
    %cst_7 = arith.constant dense<0.000000e+00> : vector<8x32xf32>
    %5 = tpu.matmul %3, %4, %cst_7 {dimension_numbers = #tpu.dot_dimension_numbers<[1], [0], [0], [1], [0, 0, 1, 1], [], []>} : vector<8x16xf32>, vector<16x32xf32>, vector<8x32xf32> -> vector<8x32xf32>
    %6 = arith.addf %2, %5 : vector<8x32xf32>
    %c0_8 = arith.constant 0 : index
    %c0_9 = arith.constant 0 : index
    %7 = vector.load %arg5[%c0_8, %c0_9] : memref<1x32xf32, #tpu.memory_space<vmem>>, vector<1x32xf32>
    %8 = vector.broadcast %7 : vector<1x32xf32> to vector<8x32xf32>
    %9 = arith.addf %6, %8 : vector<8x32xf32>
    %cst_10 = arith.constant 0.000000e+00 : f32
    %10 = vector.broadcast %cst_10 : f32 to vector<8x32xf32>
    %11 = arith.maximumf %9, %10 : vector<8x32xf32>
    %c0_11 = arith.constant 0 : index
    %c0_12 = arith.constant 0 : index
    %12 = vector.load %arg6[%c0_11, %c0_12] : memref<32x32xf32, #tpu.memory_space<vmem>>, vector<32x32xf32>
    %cst_13 = arith.constant dense<0.000000e+00> : vector<8x32xf32>
    %13 = tpu.matmul %11, %12, %cst_13 {dimension_numbers = #tpu.dot_dimension_numbers<[1], [0], [0], [1], [0, 0, 1, 1], [], []>} : vector<8x32xf32>, vector<32x32xf32>, vector<8x32xf32> -> vector<8x32xf32>
    %c0_14 = arith.constant 0 : index
    %c0_15 = arith.constant 0 : index
    %14 = vector.load %arg7[%c0_14, %c0_15] : memref<1x32xf32, #tpu.memory_space<vmem>>, vector<1x32xf32>
    %15 = vector.broadcast %14 : vector<1x32xf32> to vector<8x32xf32>
    %16 = arith.addf %13, %15 : vector<8x32xf32>
    %cst_16 = arith.constant 0.000000e+00 : f32
    %17 = vector.broadcast %cst_16 : f32 to vector<8x32xf32>
    %18 = arith.maximumf %16, %17 : vector<8x32xf32>
    %c0_17 = arith.constant 0 : index
    %c0_18 = arith.constant 0 : index
    %19 = vector.load %arg8[%c0_17, %c0_18] : memref<32x128xf32, #tpu.memory_space<vmem>>, vector<32x128xf32>
    %cst_19 = arith.constant dense<0.000000e+00> : vector<8x128xf32>
    %20 = tpu.matmul %18, %19, %cst_19 {dimension_numbers = #tpu.dot_dimension_numbers<[1], [0], [0], [1], [0, 0, 1, 1], [], []>} : vector<8x32xf32>, vector<32x128xf32>, vector<8x128xf32> -> vector<8x128xf32>
    %c0_20 = arith.constant 0 : index
    %c0_21 = arith.constant 0 : index
    %21 = vector.load %arg9[%c0_20, %c0_21] : memref<1x128xf32, #tpu.memory_space<vmem>>, vector<1x128xf32>
    %22 = vector.broadcast %21 : vector<1x128xf32> to vector<8x128xf32>
    %23 = arith.addf %20, %22 : vector<8x128xf32>
    %24 = tpu.iota {dimensions = array<i32: 1>} : vector<8x128xi32>
    %c8_i32 = arith.constant 8 : i32
    %25 = vector.broadcast %c8_i32 : i32 to vector<8x128xi32>
    %26 = arith.cmpi sge, %24, %25 : vector<8x128xi32>
    %c16_i32 = arith.constant 16 : i32
    %27 = vector.broadcast %c16_i32 : i32 to vector<8x128xi32>
    %28 = arith.cmpi slt, %24, %27 : vector<8x128xi32>
    %29 = arith.andi %26, %28 : vector<8x128xi1>
    %cst_22 = arith.constant -2.000000e+00 : f32
    %cst_23 = arith.constant 2.000000e+00 : f32
    %30 = vector.broadcast %cst_22 : f32 to vector<8x128xf32>
    %31 = arith.maximumf %30, %23 : vector<8x128xf32>
    %32 = vector.broadcast %cst_23 : f32 to vector<8x128xf32>
    %33 = arith.minimumf %32, %31 : vector<8x128xf32>
    %34 = math.exp %33 : vector<8x128xf32>
    %35 = arith.select %29, %34, %23 : vector<8x128xi1>, vector<8x128xf32>
    %c0_24 = arith.constant 0 : index
    %c0_25 = arith.constant 0 : index
    %36 = vector.load %arg10[%c0_24, %c0_25] : memref<8x128xf32, #tpu.memory_space<vmem>>, vector<8x128xf32>
    tpu.vector_store %arg10[%c0_24, %c0_25], %35 {strides = array<i32>} : memref<8x128xf32, #tpu.memory_space<vmem>>, vector<8x128xf32>,
    return
  }
  func.func @transform_0(%arg0: i32) -> (i32, i32) {
    %c0_i32 = arith.constant 0 : i32
    %c0_i32_0 = arith.constant 0 : i32
    return %arg0, %c0_i32 : i32, i32
  }
  func.func @transform_1(%arg0: i32) -> (i32, i32) {
    %c0_i32 = arith.constant 0 : i32
    %c0_i32_0 = arith.constant 0 : i32
    return %arg0, %c0_i32 : i32, i32
  }
  func.func @transform_2(%arg0: i32) -> (i32, i32) {
    %c0_i32 = arith.constant 0 : i32
    %c0_i32_0 = arith.constant 0 : i32
    %c0_i32_1 = arith.constant 0 : i32
    return %c0_i32, %c0_i32_0 : i32, i32
  }
  func.func @transform_3(%arg0: i32) -> (i32, i32) {
    %c0_i32 = arith.constant 0 : i32
    %c0_i32_0 = arith.constant 0 : i32
    %c0_i32_1 = arith.constant 0 : i32
    return %c0_i32, %c0_i32_0 : i32, i32
  }
  func.func @transform_4(%arg0: i32) -> (i32, i32) {
    %c0_i32 = arith.constant 0 : i32
    %c0_i32_0 = arith.constant 0 : i32
    %c0_i32_1 = arith.constant 0 : i32
    return %c0_i32, %c0_i32_0 : i32, i32
  }
  func.func @transform_5(%arg0: i32) -> (i32, i32) {
    %c0_i32 = arith.constant 0 : i32
    %c0_i32_0 = arith.constant 0 : i32
    %c0_i32_1 = arith.constant 0 : i32
    return %c0_i32, %c0_i32_0 : i32, i32
  }
  func.func @transform_6(%arg0: i32) -> (i32, i32) {
    %c0_i32 = arith.constant 0 : i32
    %c0_i32_0 = arith.constant 0 : i32
    %c0_i32_1 = arith.constant 0 : i32
    return %c0_i32, %c0_i32_0 : i32, i32
  }
  func.func @transform_7(%arg0: i32) -> (i32, i32) {
    %c0_i32 = arith.constant 0 : i32
    %c0_i32_0 = arith.constant 0 : i32
    %c0_i32_1 = arith.constant 0 : i32
    return %c0_i32, %c0_i32_0 : i32, i32
  }
  func.func @transform_8(%arg0: i32) -> (i32, i32) {
    %c0_i32 = arith.constant 0 : i32
    %c0_i32_0 = arith.constant 0 : i32
    %c0_i32_1 = arith.constant 0 : i32
    return %c0_i32, %c0_i32_0 : i32, i32
  }
  func.func @transform_9(%arg0: i32) -> (i32, i32) {
    %c0_i32 = arith.constant 0 : i32
    %c0_i32_0 = arith.constant 0 : i32
    return %arg0, %c0_i32 : i32, i32
  }
}

</mosaic_0001>

<bundles_post_ra>
// kernel: stochastic_net_forward.1
= control target key start
LH: loop header
LB: loop body
LE: loop exit
PB: predicated region body
PF: predicated region fallthrough
CT: control target
= control target key end

     0   :  { %v462_v0 = vmov 0.0|0.0   ;;  %vm463_vm0 = vmmov 0   ;;  %v464_v6 = vmov 0.0   ;;  %vm38_vm1 = vcmask 130048   ;;  %s573_s3 = inlined_call_operand.vmem [shape: f32[16,32], index: 3, kind: input, shape index: {}]   ;;  %s574_s2 = inlined_call_operand.vmem [shape: f32[16,32], index: 2, kind: input, shape index: {}]   ;;  %s575_s1 = inlined_call_operand.vmem [shape: f32[8,16], index: 1, kind: input, shape index: {}]   ;;  %s576_s0 = inlined_call_operand.vmem [shape: f32[8,16], index: 0, kind: input, shape index: {}]   ;;  %s577_s5 = inlined_call_operand.vmem [shape: f32[32,32], index: 5, kind: input, shape index: {}]   ;;  %s578_s7 = inlined_call_operand.vmem [shape: f32[32,128], index: 7, kind: input, shape index: {}]   ;;  %s579_s4 = inlined_call_operand.vmem [shape: f32[1,32], index: 4, kind: input, shape index: {}]   ;;  %s580_s6 = inlined_call_operand.vmem [shape: f32[1,32], index: 6, kind: input, shape index: {}]   ;;  %s581_s8 = inlined_call_operand.vmem [shape: f32[1,128], index: 8, kind: input, shape index: {}]   ;;  %s582_s9 = inlined_call_operand.vmem [shape: f32[8,128], index: 9, kind: output, shape index: {}]  }
   0x1   :  { %439 = vmatprep.subr.bf16.mxu0 %v462_v0  ;;  %442 = vmatprep.subr.bf16.mxu1 %v462_v0  ;;  %v36_v1 = vld [vmem:[%s573_s3] sm:$0xff]  ;;  %v37_v2 = vld [vmem:[%s573_s3 + $0x8] sm:$0xff]  ;;  %v196_v13 = vld [vmem:[%s577_s5 + $0x10] sm:$0xff]  ;;  %vm205_vm2 = vcmask 261120   ;;  %v364_v40 = vlaneseq }
   0x2   :  { %v33_v3 = vld [vmem:[%s574_s2] sm:$0xff]  ;;  %v440_v4 = vpack.c.bf16 %v37_v2, %v36_v1  ;;  %v34_v5 = vld [vmem:[%s574_s2 + $0x8] sm:$0xff]  ;;  %407 = vmatprep.mubr.msk.f32.mxu0 %vm463_vm0, %v464_v6  ;;  %414 = vmatprep.mubr.msk.f32.mxu1 %vm463_vm0, %v464_v6  ;;  %v197_v14 = vld [vmem:[%s577_s5 + $0x18] sm:$0xff] }
   0x3   :  { %v443_v7 = vpack.c.bf16 %v34_v5, %v33_v3  ;;  %v35_v8 = vld [vmem:[%s575_s1] sm:$0xff]  ;;  %v195_v11 = vld [vmem:[%s577_s5 + $0x8] sm:$0xff]  ;;  %v449_v15 = vpack.c.bf16 %v197_v14, %v196_v13  ;;  %v282_v27 = vld [vmem:[%s578_s7 + $0x10] sm:$0xff]  ;;  %v365_v42 = vand.u32 127, %v364_v40 }
   0x4   :  { %441 = vmatpush3.bf16.msra.mxu0 %v440_v4  ;;  %v32_v9 = vld [vmem:[%s576_s0] sm:$0xff]  ;;  %v281_v17 = vld [vmem:[%s578_s7 + $0x8] sm:$0xff]  ;;  %v283_v28 = vld [vmem:[%s578_s7 + $0x18] sm:$0xff] }
   0x5   :  { %444 = vmatpush3.bf16.msra.mxu1 %v443_v7  ;;  %445 = vmatprep.subr.bf16.mxu0 %v462_v0  ;;  %v194_v10 = vld [vmem:[%s577_s5] sm:$0xff]  ;;  %v455_v29 = vpack.c.bf16 %v283_v28, %v282_v27  ;;  %vm366_vm3 = vcmp.ge.s32.totalorder %v365_v42, 8  ;;  %vm367_vm4 = vcmp.lt.s32.totalorder %v365_v42, 16 }
   0x6   :  { %451 = vmatprep.subr.bf16.mxu1 %v462_v0  ;;  %v446_v12 = vpack.c.bf16 %v195_v11, %v194_v10  ;;  %v280_v16 = vld [vmem:[%s578_s7] sm:$0xff]  ;;  %vm368_vm5 = vmand %vm366_vm3, %vm367_vm4 }
   0x7   :  { %408 = vmatmul.mubr.msk.f32.vlgmr.msra.gmra.mrb[0].mxu0 %vm38_vm1, %v35_v8  ;;  %v452_v18 = vpack.c.bf16 %v281_v17, %v280_v16  ;;  %v381_v21 = vld [vmem:[%s579_s4] ss:$0 sm:$0xff] }
   0x8   :  { %415 = vmatmul.mubr.msk.f32.vlgmr.msra.gmra.mrb[0].mxu1 %vm38_vm1, %v32_v9  ;;  %425 = vmatprep.mubr.msk.f32.mxu0 %vm463_vm0, %v464_v6  ;;  %v382_v30 = vld [vmem:[%s580_s6] ss:$0 sm:$0xff] }
   0x9   :  { %436 = vmatprep.mubr.msk.f32.mxu1 %vm463_vm0, %v464_v6  ;;  %447 = vmatpush3.bf16.msra.mxu0 %v446_v12  ;;  %v384_v35 = vld [vmem:[%s581_s8] ss:$0 sm:$0xff] }
   0xa   :  { %448 = vmatprep.subr.bf16.mxu0 %v462_v0  ;;  %453 = vmatpush3.bf16.msra.mxu1 %v452_v18 }
   0xb   :  { %454 = vmatprep.subr.bf16.mxu1 %v462_v0 }
   0xd   :  { %450 = vmatpush3.bf16.msra.mxu0 %v449_v15 }
   0xe   :  { %456 = vmatpush3.bf16.msra.mxu1 %v455_v29 }
  0xda   :  { %v108_v19 = vpop.f32.mrb[0].mxu0 }
  0xdb   :  { %v181_v20 = vpop.f32.mrb[0].mxu1  ;;  %v409_v22 = vpop.f32.mrb[1].mxu0 }
  0xdc   :  { %v182_v23 = vadd.f32 %v181_v20, %v108_v19  ;;  %v416_v24 = vpop.f32.mrb[1].mxu1 }
  0xde   :  { %v192_v25 = vadd.f32 %v381_v21, %v182_v23 }
  0xe0   :  { %v193_v26 = vmax.f32 %v192_v25, 0.0 }
  0xe2   :  { %426 = vmatmul.mubr.msk.f32.vlgmr.msra.gmra.mrb[2].mxu0 %vm205_vm2, %v193_v26 }
 0x1b5   :  { %v275_v31 = vpop.f32.mrb[2].mxu0 }
 0x1b6   :  { %v276_v32 = vadd.f32 %v382_v30, %v275_v31  ;;  %v427_v33 = vpop.f32.mrb[3].mxu0 }
 0x1b8   :  { %v279_v34 = vmax.f32 %v276_v32, 0.0 }
 0x1ba   :  { %437 = vmatmul.mubr.msk.f32.vlgmr.msra.gmra.mrb[2].mxu1 %vm205_vm2, %v279_v34 }
 0x28d   :  { %v360_v36 = vpop.f32.mrb[2].mxu1 }
 0x28e   :  { %v361_v37 = vadd.f32 %v384_v35, %v360_v36  ;;  %v438_v38 = vpop.f32.mrb[3].mxu1 }
 0x290   :  { %v386_v39 = vclamps-f32 %v361_v37, 2.0 }
 0x292   :  { %v371_v41 = vmul.f32 1.442695, %v386_v39 }
 0x294   :  { %460 = vpow2.f32 %v371_v41 }
 0x29e   :  { %v461_v43 = vpop.eup %460 }
 0x29f   :  { %v373_v44 = vsel %vm368_vm5, %v461_v43, %v361_v37 }
 0x2a0   :  { %374 = vst [vmem:[%s582_s9] sm:$0xff] %v373_v44 }

</bundles_post_ra>
